<compile_context>
chip_gen: v5e
topology: v5e:2x2
jax: 0.10.0
libtpu: 0.0.40
codegen_flags: <defaults>
</compile_context>

<pallas_src>
import functools

import jax
import jax.numpy as jnp
from jax.experimental import pallas as pl
from jax.experimental.pallas import tpu as pltpu


def _concat_dma_kernel(*refs, channels, splits):
    """Pure HBM->HBM DMA concat along the channel (major) dim of NCHW arrays.

    refs = (*in_hbm_refs, out_hbm_ref, dma_sems)
      in_hbm_refs[i] : (N, Ci, H, W) ref left in place (HBM)
      out_hbm_ref    : (N, Ctot, H, W) ref left in place (HBM)
      dma_sems       : DMA semaphore array of shape (sum(splits),)

    Each input i is copied with `splits[i]` independent DMAs (static channel
    chunks) into its channel window of the output.  All DMAs are started
    before any wait so they overlap.
    """
    n_in = len(channels)
    in_refs = refs[:n_in]
    out_ref = refs[n_in]
    sems = refs[n_in + 1]

    copies = []
    sem_idx = 0
    c_off = 0
    for x, c, k in zip(in_refs, channels, splits):
        # Static channel-chunk boundaries for this input (k <= c).
        base, rem = divmod(c, k)
        c0 = 0
        for j in range(k):
            c1 = c0 + base + (1 if j < rem else 0)
            cp = pltpu.make_async_copy(
                x.at[:, c0:c1, :, :],
                out_ref.at[:, c_off + c0:c_off + c1, :, :],
                sems.at[sem_idx],
            )
            cp.start()
            copies.append(cp)
            sem_idx += 1
            c0 = c1
        c_off += c

    # All DMAs are in flight; only block at the end.
    for cp in copies:
        cp.wait()


_TARGET_CHUNK_BYTES = 512 * 1024   # per-DMA target size for the fan-out heuristic
_MAX_FANOUT_PER_INPUT = 8          # enough outstanding DMAs for v7x; v6e/v5e saturate earlier


def concat_pallas(xs, dimension=1, *, min_pallas_bytes=1 << 20):
    """Pallas equivalent of Concat(dimension).forward(xs) for NCHW feature maps."""
    # TODO(synk): only the YOLO-style channel concat (dim=1, NCHW) is implemented.
    assert dimension == 1, "kernel implements channel-dim (dim=1) concat for NCHW"
    xs = list(xs)
    if len(xs) == 1:
        return xs[0]

    N, _, H, W = xs[0].shape
    dtype = xs[0].dtype
    for x in xs:
        assert x.ndim == 4 and x.shape[0] == N and x.shape[2] == H and x.shape[3] == W
        assert x.dtype == dtype

    channels = tuple(int(x.shape[1]) for x in xs)
    c_total = sum(channels)

    total_bytes = sum(int(x.size) * x.dtype.itemsize for x in xs)
    # Tiny late-stage maps: kernel launch + DMA descriptor fixed cost dominates;
    # let XLA's native concat fusion handle them.
    if total_bytes < min_pallas_bytes:
        return jnp.concatenate(xs, axis=dimension)

    # Per-input DMA fan-out along the major channel dim (seams stay aligned for
    # any dtype / channel count; no sublane-misaligned partial-tile writes).
    splits = []
    for x, c in zip(xs, channels):
        b = int(x.size) * x.dtype.itemsize
        k = max(1, min(c, _MAX_FANOUT_PER_INPUT, b // _TARGET_CHUNK_BYTES))
        splits.append(int(k))
    splits = tuple(splits)
    num_dmas = sum(splits)

    # Zero-FLOP, bandwidth-only op: read every byte once, write it once.
    cost = pl.CostEstimate(flops=0, transcendentals=0,
                           bytes_accessed=2 * total_bytes)

    out = pl.pallas_call(
        functools.partial(_concat_dma_kernel, channels=channels, splits=splits),
        out_shape=jax.ShapeDtypeStruct((N, c_total, H, W), dtype),
        # Pin everything to HBM; the kernel moves bytes with explicit DMAs.
        in_specs=[pl.BlockSpec(memory_space=pltpu.MemorySpace.HBM) for _ in xs],
        out_specs=pl.BlockSpec(memory_space=pltpu.MemorySpace.HBM),
        scratch_shapes=[pltpu.SemaphoreType.DMA((num_dmas,))],
        compiler_params=pltpu.CompilerParams(has_side_effects=True),
        cost_estimate=cost,
    )(*xs)
    return out


if __name__ == "__main__":
    key = jax.random.PRNGKey(0)
    k1, k2, k3 = jax.random.split(key, 3)

    # Small NCHW feature maps, different channel counts (typical YOLO neck concat).
    x1 = jax.random.normal(k1, (2, 4, 16, 16), dtype=jnp.float32)
    x2 = jax.random.normal(k2, (2, 8, 16, 16), dtype=jnp.float32)
    x3 = jax.random.normal(k3, (2, 4, 16, 16), dtype=jnp.float32)

    ref = jnp.concatenate([x1, x2, x3], axis=1)

    # Force the Pallas DMA path even at this small size so the kernel itself runs.
    out = concat_pallas([x1, x2, x3], dimension=1, min_pallas_bytes=0)
    out = jax.block_until_ready(out)
    assert out.shape == (2, 16, 16, 16), out.shape
    assert jnp.array_equal(out, ref), "pallas path mismatch vs jnp.concatenate"

    # Default path: tiny inputs fall back to XLA's native concat fusion.
    out_fb = jax.block_until_ready(concat_pallas([x1, x2, x3], dimension=1))
    assert jnp.array_equal(out_fb, ref), "fallback path mismatch"

    # Odd channel counts + bf16: seam offsets are not sublane-tile multiples,
    # but slicing on the major channel dim keeps this exact.
    y1 = jax.random.normal(k1, (2, 3, 16, 16), dtype=jnp.bfloat16)
    y2 = jax.random.normal(k2, (2, 5, 16, 16), dtype=jnp.bfloat16)
    out_bf = jax.block_until_ready(
        concat_pallas([y1, y2], dimension=1, min_pallas_bytes=0))
    assert jnp.array_equal(out_bf, jnp.concatenate([y1, y2], axis=1)), "bf16 mismatch"

    print("KERNEL_OK")
</pallas_src>

<mosaic_0001>
module attributes {stable_mosaic.version = 11 : i64} {
  func.func @_concat_dma_kernel(%arg0: memref<2x4x16x16xf32, #tpu.memory_space<hbm>>, %arg1: memref<2x8x16x16xf32, #tpu.memory_space<hbm>>, %arg2: memref<2x4x16x16xf32, #tpu.memory_space<hbm>>, %arg3: memref<2x16x16x16xf32, #tpu.memory_space<hbm>>, %arg4: memref<3x!tpu.dma_semaphore, #tpu.memory_space<semaphore_mem>>) attributes {dimension_semantics = [], scalar_prefetch = 0 : i64, scratch_operands = 1 : i64, tpu.core_type = #tpu.core_type<tc>} {
    %c0_i32 = arith.constant 0 : i32
    %c0_i32_0 = arith.constant 0 : i32
    %c0_i32_1 = arith.constant 0 : i32
    %c0_i32_2 = arith.constant 0 : i32
    %c0_i32_3 = arith.constant 0 : i32
    %0 = tpu.memref_slice %arg0[%c0_i32_0, %c0_i32_1, %c0_i32_2, %c0_i32_3] : memref<2x4x16x16xf32, #tpu.memory_space<hbm>> -> memref<2x4x16x16xf32, #tpu.memory_space<hbm>>
    %c0_i32_4 = arith.constant 0 : i32
    %c0_i32_5 = arith.constant 0 : i32
    %c0_i32_6 = arith.constant 0 : i32
    %c0_i32_7 = arith.constant 0 : i32
    %1 = tpu.memref_slice %arg3[%c0_i32_4, %c0_i32_5, %c0_i32_6, %c0_i32_7] : memref<2x16x16x16xf32, #tpu.memory_space<hbm>> -> memref<2x4x16x16xf32, #tpu.memory_space<hbm>>
    %2 = tpu.memref_slice %arg4[%c0_i32] : memref<3x!tpu.dma_semaphore, #tpu.memory_space<semaphore_mem>> -> memref<1x!tpu.dma_semaphore, #tpu.memory_space<semaphore_mem>>
    %3 = tpu.memref_squeeze %2 : memref<1x!tpu.dma_semaphore, #tpu.memory_space<semaphore_mem>> -> memref<!tpu.dma_semaphore, #tpu.memory_space<semaphore_mem>>
    tpu.enqueue_dma source(%0 : memref<2x4x16x16xf32, #tpu.memory_space<hbm>>) target(%1 : memref<2x4x16x16xf32, #tpu.memory_space<hbm>>) target_semaphore(%3 : memref<!tpu.dma_semaphore, #tpu.memory_space<semaphore_mem>>)
    %c1_i32 = arith.constant 1 : i32
    %c0_i32_8 = arith.constant 0 : i32
    %c0_i32_9 = arith.constant 0 : i32
    %c0_i32_10 = arith.constant 0 : i32
    %c0_i32_11 = arith.constant 0 : i32
    %4 = tpu.memref_slice %arg1[%c0_i32_8, %c0_i32_9, %c0_i32_10, %c0_i32_11] : memref<2x8x16x16xf32, #tpu.memory_space<hbm>> -> memref<2x8x16x16xf32, #tpu.memory_space<hbm>>
    %c0_i32_12 = arith.constant 0 : i32
    %c4_i32 = arith.constant 4 : i32
    %c0_i32_13 = arith.constant 0 : i32
    %c0_i32_14 = arith.constant 0 : i32
    %5 = tpu.memref_slice %arg3[%c0_i32_12, %c4_i32, %c0_i32_13, %c0_i32_14] : memref<2x16x16x16xf32, #tpu.memory_space<hbm>> -> memref<2x8x16x16xf32, #tpu.memory_space<hbm>>
    %6 = tpu.memref_slice %arg4[%c1_i32] : memref<3x!tpu.dma_semaphore, #tpu.memory_space<semaphore_mem>> -> memref<1x!tpu.dma_semaphore, #tpu.memory_space<semaphore_mem>>
    %7 = tpu.memref_squeeze %6 : memref<1x!tpu.dma_semaphore, #tpu.memory_space<semaphore_mem>> -> memref<!tpu.dma_semaphore, #tpu.memory_space<semaphore_mem>>
    tpu.enqueue_dma source(%4 : memref<2x8x16x16xf32, #tpu.memory_space<hbm>>) target(%5 : memref<2x8x16x16xf32, #tpu.memory_space<hbm>>) target_semaphore(%7 : memref<!tpu.dma_semaphore, #tpu.memory_space<semaphore_mem>>)
    %c2_i32 = arith.constant 2 : i32
    %c0_i32_15 = arith.constant 0 : i32
    %c0_i32_16 = arith.constant 0 : i32
    %c0_i32_17 = arith.constant 0 : i32
    %c0_i32_18 = arith.constant 0 : i32
    %8 = tpu.memref_slice %arg2[%c0_i32_15, %c0_i32_16, %c0_i32_17, %c0_i32_18] : memref<2x4x16x16xf32, #tpu.memory_space<hbm>> -> memref<2x4x16x16xf32, #tpu.memory_space<hbm>>
    %c0_i32_19 = arith.constant 0 : i32
    %c12_i32 = arith.constant 12 : i32
    %c0_i32_20 = arith.constant 0 : i32
    %c0_i32_21 = arith.constant 0 : i32
    %9 = tpu.memref_slice %arg3[%c0_i32_19, %c12_i32, %c0_i32_20, %c0_i32_21] : memref<2x16x16x16xf32, #tpu.memory_space<hbm>> -> memref<2x4x16x16xf32, #tpu.memory_space<hbm>>
    %10 = tpu.memref_slice %arg4[%c2_i32] : memref<3x!tpu.dma_semaphore, #tpu.memory_space<semaphore_mem>> -> memref<1x!tpu.dma_semaphore, #tpu.memory_space<semaphore_mem>>
    %11 = tpu.memref_squeeze %10 : memref<1x!tpu.dma_semaphore, #tpu.memory_space<semaphore_mem>> -> memref<!tpu.dma_semaphore, #tpu.memory_space<semaphore_mem>>
    tpu.enqueue_dma source(%8 : memref<2x4x16x16xf32, #tpu.memory_space<hbm>>) target(%9 : memref<2x4x16x16xf32, #tpu.memory_space<hbm>>) target_semaphore(%11 : memref<!tpu.dma_semaphore, #tpu.memory_space<semaphore_mem>>)
    %c0_i32_22 = arith.constant 0 : i32
    %c0_i32_23 = arith.constant 0 : i32
    %c0_i32_24 = arith.constant 0 : i32
    %c0_i32_25 = arith.constant 0 : i32
    %c0_i32_26 = arith.constant 0 : i32
    %12 = tpu.memref_slice %arg0[%c0_i32_23, %c0_i32_24, %c0_i32_25, %c0_i32_26] : memref<2x4x16x16xf32, #tpu.memory_space<hbm>> -> memref<2x4x16x16xf32, #tpu.memory_space<hbm>>
    %c0_i32_27 = arith.constant 0 : i32
    %c0_i32_28 = arith.constant 0 : i32
    %c0_i32_29 = arith.constant 0 : i32
    %c0_i32_30 = arith.constant 0 : i32
    %13 = tpu.memref_slice %arg3[%c0_i32_27, %c0_i32_28, %c0_i32_29, %c0_i32_30] : memref<2x16x16x16xf32, #tpu.memory_space<hbm>> -> memref<2x4x16x16xf32, #tpu.memory_space<hbm>>
    %14 = tpu.memref_slice %arg4[%c0_i32_22] : memref<3x!tpu.dma_semaphore, #tpu.memory_space<semaphore_mem>> -> memref<1x!tpu.dma_semaphore, #tpu.memory_space<semaphore_mem>>
    %15 = tpu.memref_squeeze %14 : memref<1x!tpu.dma_semaphore, #tpu.memory_space<semaphore_mem>> -> memref<!tpu.dma_semaphore, #tpu.memory_space<semaphore_mem>>
    tpu.wait_dma2 semaphore(%15 : memref<!tpu.dma_semaphore, #tpu.memory_space<semaphore_mem>>) src(%12 : memref<2x4x16x16xf32, #tpu.memory_space<hbm>>) dst(%13 : memref<2x4x16x16xf32, #tpu.memory_space<hbm>>)
    %c1_i32_31 = arith.constant 1 : i32
    %c0_i32_32 = arith.constant 0 : i32
    %c0_i32_33 = arith.constant 0 : i32
    %c0_i32_34 = arith.constant 0 : i32
    %c0_i32_35 = arith.constant 0 : i32
    %16 = tpu.memref_slice %arg1[%c0_i32_32, %c0_i32_33, %c0_i32_34, %c0_i32_35] : memref<2x8x16x16xf32, #tpu.memory_space<hbm>> -> memref<2x8x16x16xf32, #tpu.memory_space<hbm>>
    %c0_i32_36 = arith.constant 0 : i32
    %c4_i32_37 = arith.constant 4 : i32
    %c0_i32_38 = arith.constant 0 : i32
    %c0_i32_39 = arith.constant 0 : i32
    %17 = tpu.memref_slice %arg3[%c0_i32_36, %c4_i32_37, %c0_i32_38, %c0_i32_39] : memref<2x16x16x16xf32, #tpu.memory_space<hbm>> -> memref<2x8x16x16xf32, #tpu.memory_space<hbm>>
    %18 = tpu.memref_slice %arg4[%c1_i32_31] : memref<3x!tpu.dma_semaphore, #tpu.memory_space<semaphore_mem>> -> memref<1x!tpu.dma_semaphore, #tpu.memory_space<semaphore_mem>>
    %19 = tpu.memref_squeeze %18 : memref<1x!tpu.dma_semaphore, #tpu.memory_space<semaphore_mem>> -> memref<!tpu.dma_semaphore, #tpu.memory_space<semaphore_mem>>
    tpu.wait_dma2 semaphore(%19 : memref<!tpu.dma_semaphore, #tpu.memory_space<semaphore_mem>>) src(%16 : memref<2x8x16x16xf32, #tpu.memory_space<hbm>>) dst(%17 : memref<2x8x16x16xf32, #tpu.memory_space<hbm>>)
    %c2_i32_40 = arith.constant 2 : i32
    %c0_i32_41 = arith.constant 0 : i32
    %c0_i32_42 = arith.constant 0 : i32
    %c0_i32_43 = arith.constant 0 : i32
    %c0_i32_44 = arith.constant 0 : i32
    %20 = tpu.memref_slice %arg2[%c0_i32_41, %c0_i32_42, %c0_i32_43, %c0_i32_44] : memref<2x4x16x16xf32, #tpu.memory_space<hbm>> -> memref<2x4x16x16xf32, #tpu.memory_space<hbm>>
    %c0_i32_45 = arith.constant 0 : i32
    %c12_i32_46 = arith.constant 12 : i32
    %c0_i32_47 = arith.constant 0 : i32
    %c0_i32_48 = arith.constant 0 : i32
    %21 = tpu.memref_slice %arg3[%c0_i32_45, %c12_i32_46, %c0_i32_47, %c0_i32_48] : memref<2x16x16x16xf32, #tpu.memory_space<hbm>> -> memref<2x4x16x16xf32, #tpu.memory_space<hbm>>
    %22 = tpu.memref_slice %arg4[%c2_i32_40] : memref<3x!tpu.dma_semaphore, #tpu.memory_space<semaphore_mem>> -> memref<1x!tpu.dma_semaphore, #tpu.memory_space<semaphore_mem>>
    %23 = tpu.memref_squeeze %22 : memref<1x!tpu.dma_semaphore, #tpu.memory_space<semaphore_mem>> -> memref<!tpu.dma_semaphore, #tpu.memory_space<semaphore_mem>>
    tpu.wait_dma2 semaphore(%23 : memref<!tpu.dma_semaphore, #tpu.memory_space<semaphore_mem>>) src(%20 : memref<2x4x16x16xf32, #tpu.memory_space<hbm>>) dst(%21 : memref<2x4x16x16xf32, #tpu.memory_space<hbm>>)
    return
  }
}

</mosaic_0001>

<bundles_post_ra>
// kernel: tpu_custom_call.1
= control target key start
LH: loop header
LB: loop body
LE: loop exit
PB: predicated region body
PF: predicated region fallthrough
CT: control target
= control target key end

     0   :  { %s119_s18 = smov 1024   ;;  %s120_s19 = smov 4096   ;;  %s169_s0 = inlined_call_operand.hbm [shape: f32[2,4,16,16], index: 0, kind: input, shape index: {}]   ;;  %s170_s1 = inlined_call_operand.hbm [shape: f32[2,8,16,16], index: 1, kind: input, shape index: {}]   ;;  %s171_s2 = inlined_call_operand.hbm [shape: f32[2,4,16,16], index: 2, kind: input, shape index: {}]   ;;  %s172_s3 = inlined_call_operand.hbm [shape: f32[2,16,16,16], index: 3, kind: output, shape index: {}]  }
   0x1   :  { %s12_s14 = sshll.u32 %s169_s0, 4  ;;  %s14_s17 = sshll.u32 %s172_s3, 4  ;;  %s13_s14 = int_to_ptr.hbm [resolvable:$true] %s12_s14  ;;  %s15_s17 = int_to_ptr.hbm [resolvable:$true] %s14_s17 }
   0x2   :  { %19 = sst [smem:[#allocation4]] %s119_s18  ;;  %s121_s20 = smov 64  }
   0x3   :  { %21 = sst [smem:[#allocation4 + $0x1]] %s120_s19  ;;  %s122_s21 = smov [#allocation2]  }
   0x4   :  { %23 = sst [smem:[#allocation4 + $0x2]] %s121_s20  ;;  %s123_s22 = smov [#allocation3]  }
   0x5   :  { %s124_s23 = smov 0   ;;  %s125_s24 = smov 2048  }
   0x6   :  { %25 = dma.general %s13_s14, 2048, %s15_s17, %s122_s21, %s123_s22, [#allocation4], %s124_s23, 0  }
   0x7   :  { %39 = sst [smem:[#allocation6]] %s125_s24  ;;  %s26_s26 = scalar_lea.hbm %s172_s3, 64 }
   0x8   :  { %41 = sst [smem:[#allocation6 + $0x1]] %s120_s19  ;;  %s126_s27 = smov 128  }
   0x9   :  { %43 = sst [smem:[#allocation6 + $0x2]] %s126_s27  ;;  %s32_s30 = sshll.u32 %s170_s1, 4  ;;  %s33_s30 = int_to_ptr.hbm [resolvable:$true] %s32_s30 }
   0xa   :  { %s34_s4 = sshll.u32 %s26_s26, 4  ;;  %s46_s7 = scalar_lea.hbm %s172_s3, 192  ;;  %s35_s4 = int_to_ptr.hbm [resolvable:$true] %s34_s4 }
   0xb   :  { %s127_s8 = smov [#allocation2 + $0x1]   ;;  %s128_s9 = smov [#allocation5]  }
   0xc   :  { %45 = dma.general %s33_s30, 4096, %s35_s4, %s127_s8, %s128_s9, [#allocation6], %s124_s23, 0  }
   0xd   :  { %59 = sst [smem:[#allocation8]] %s119_s18  ;;  %s52_s12 = sshll.u32 %s171_s2, 4  ;;  %s53_s12 = int_to_ptr.hbm [resolvable:$true] %s52_s12 }
   0xe   :  { %61 = sst [smem:[#allocation8 + $0x1]] %s120_s19  ;;  %s54_s13 = sshll.u32 %s46_s7, 4  ;;  %s55_s13 = int_to_ptr.hbm [resolvable:$true] %s54_s13 }
   0xf   :  { %63 = sst [smem:[#allocation8 + $0x2]] %s121_s20  ;;  %s129_s1 = smov [#allocation2 + $0x2]  }
  0x10   :  { %s130_s14 = smov [#allocation7]  }
  0x11   :  { %65 = dma.general %s53_s12, 2048, %s55_s13, %s129_s1, %s130_s14, [#allocation8], %s124_s23, 0  }
  0x12   :  { %113 = dma.done.wait [#allocation2], 2048 }
  0x13   :  { %114 = vsyncadd [#allocation2], 4294965248 }
  0x14   :  { %115 = dma.done.wait [#allocation2 + $0x1], 4096 }
  0x15   :  { %116 = vsyncadd [#allocation2 + $0x1], 4294963200 }
  0x16   :  { %117 = dma.done.wait [#allocation2 + $0x2], 2048 }
  0x17   :  { %118 = vsyncadd [#allocation2 + $0x2], 4294965248 }
  0x18   :  { %78 = vsyncmov [#allocation2] }
  0x1b   :  { %s79_s3 = vpop.sfrf %78 }
  0x1c   :  { %p98_p0 = scmp.ne.s32.totalorder %s79_s3, 0 }
  0x1e   :  { %83 = shalt.err (%p98_p0)  }
  0x1f   :  { %85 = vsyncmov [#allocation2 + $0x1] }
  0x22   :  { %s86_s2 = vpop.sfrf %85 }
  0x23   :  { %p99_p1 = scmp.ne.s32.totalorder %s86_s2, 0 }
  0x25   :  { %90 = shalt.err (%p99_p1)  }
  0x26   :  { %92 = vsyncmov [#allocation2 + $0x2] }
  0x29   :  { %s93_s15 = vpop.sfrf %92 }
  0x2a   :  { %p100_p2 = scmp.ne.s32.totalorder %s93_s15, 0 }
  0x2c   :  { %97 = shalt.err (%p100_p2)  }

</bundles_post_ra>
